<compile_context>
chip_gen: v6e
topology: v6e:2x2x1
jax: 0.10.0
libtpu: 0.0.40
codegen_flags: <defaults>
</compile_context>

<pallas_src>
import functools

import jax
import jax.numpy as jnp
from jax.experimental import pallas as pl
from jax.experimental.pallas import tpu as pltpu


# ----------------------------------------------------------------------------
# Fused DownBlock kernel
# ----------------------------------------------------------------------------
def _downblock_kernel(x_ref, w_ref, g_ref, b_ref, o_ref, sum_ref, sq_ref, *,
                      eps, slope):
    n = pl.program_id(0)
    ho1, wo1, _ = x_ref.shape          # (Ho+1, Wo+1, 4*Cin) phase-packed image
    ho, wo = ho1 - 1, wo1 - 1
    rows = ho * wo
    m_total = o_ref.shape[0]           # N * Ho * Wo

    @pl.when(n == 0)
    def _init():
        sum_ref[...] = jnp.zeros_like(sum_ref)
        sq_ref[...] = jnp.zeros_like(sq_ref)

    # --- fused LeakyReLU(0.2) prologue (padding zeros stay zero) ---
    x = x_ref[...]
    x = jnp.where(x >= 0, x, slope * x)

    # --- im2col in VMEM from the 2x2 phase-packed padded input ---
    # column order: (p, q, a, b, ci) with (di, dj) = (2p + a, 2q + b);
    # the weight matrix was permuted to the same row order in the wrapper.
    pieces = [x[p:p + ho, q:q + wo, :] for p in range(2) for q in range(2)]
    patches = jnp.concatenate(pieces, axis=-1)            # (Ho, Wo, 16*Cin)
    a = patches.reshape(rows, patches.shape[-1]).astype(jnp.bfloat16)

    # --- MXU matmul, f32 accumulation ---
    y = jnp.dot(a, w_ref[...], preferred_element_type=jnp.float32)  # (rows, Cout)

    start = n * rows
    if rows % 8 == 0:
        start = pl.multiple_of(start, 8)
    o_ref[pl.ds(start, rows), :] = y

    # --- BatchNorm batch-statistics accumulators (over N, Ho, Wo) ---
    sum_ref[...] += jnp.sum(y, axis=0, keepdims=True)
    sq_ref[...] += jnp.sum(y * y, axis=0, keepdims=True)

    # --- finalize: normalize + affine on the VMEM-resident output ---
    @pl.when(n == pl.num_programs(0) - 1)
    def _finalize():
        inv_m = 1.0 / float(m_total)
        mean = sum_ref[...] * inv_m
        var = sq_ref[...] * inv_m - mean * mean            # biased variance
        scale = g_ref[...] * jax.lax.rsqrt(var + eps)
        shift = b_ref[...] - mean * scale
        o_ref[...] = o_ref[...] * scale + shift


def downblock_forward(params, x_nchw, *, eps=1e-5, slope=0.2):
    """DownBlock forward: BN(Conv4x4s2p1(LeakyReLU(x))), NCHW in / NCHW out."""
    w = params["w"]                      # (4, 4, Cin, Cout), HWIO
    gamma = params["gamma"]              # (Cout,)
    beta = params["beta"]                # (Cout,)
    N, Cin, H, W = x_nchw.shape
    assert H % 2 == 0 and W % 2 == 0
    Ho, Wo = H // 2, W // 2
    Cout = w.shape[-1]
    M = N * Ho * Wo

    # NCHW -> NHWC, spatial pad by 1, pack the 2x2 sub-pixel phases along the
    # channel axis (channel order (a, b, ci)).  Same total bytes as the input;
    # the 16x im2col expansion happens in VMEM inside the kernel.
    x = jnp.transpose(x_nchw, (0, 2, 3, 1)).astype(jnp.float32)
    xp = jnp.pad(x, ((0, 0), (1, 1), (1, 1), (0, 0)))
    phases = [xp[:, a::2, b::2, :] for a in (0, 1) for b in (0, 1)]
    xph = jnp.concatenate(phases, axis=-1)        # (N, Ho+1, Wo+1, 4*Cin)

    # Weight (di, dj, ci, co) -> rows ordered (p, q, a, b, ci), bf16 for MXU.
    w_perm = (w.reshape(2, 2, 2, 2, Cin, Cout)    # (p, a, q, b, ci, co)
               .transpose(0, 2, 1, 3, 4, 5)       # (p, q, a, b, ci, co)
               .reshape(16 * Cin, Cout)
               .astype(jnp.bfloat16))

    kern = functools.partial(_downblock_kernel, eps=eps, slope=slope)
    out2d = pl.pallas_call(
        kern,
        out_shape=jax.ShapeDtypeStruct((M, Cout), jnp.float32),
        grid=(N,),
        in_specs=[
            pl.BlockSpec((None, Ho + 1, Wo + 1, 4 * Cin),
                         lambda n: (n, 0, 0, 0)),
            pl.BlockSpec((16 * Cin, Cout), lambda n: (0, 0)),
            pl.BlockSpec((1, Cout), lambda n: (0, 0)),
            pl.BlockSpec((1, Cout), lambda n: (0, 0)),
        ],
        # Output is VMEM-resident across the whole grid (constant block index)
        # so the BN finalize can rewrite it in place before the single HBM
        # writeback at the end.
        out_specs=pl.BlockSpec((M, Cout), lambda n: (0, 0)),
        scratch_shapes=[pltpu.VMEM((1, Cout), jnp.float32),   # per-channel sum
                        pltpu.VMEM((1, Cout), jnp.float32)],  # per-channel sum of squares
        compiler_params=pltpu.CompilerParams(
            dimension_semantics=("arbitrary",)),
    )(xph, w_perm,
      gamma.reshape(1, Cout).astype(jnp.float32),
      beta.reshape(1, Cout).astype(jnp.float32))

    y = out2d.reshape(N, Ho, Wo, Cout)
    return jnp.transpose(y, (0, 3, 1, 2))         # back to NCHW


# ----------------------------------------------------------------------------
# Pure-JAX reference (for a sanity check) and parameter init
# ----------------------------------------------------------------------------
def downblock_reference(params, x_nchw, *, eps=1e-5, slope=0.2):
    x = jnp.transpose(x_nchw, (0, 2, 3, 1)).astype(jnp.float32)
    x = jnp.where(x >= 0, x, slope * x)
    y = jax.lax.conv_general_dilated(
        x, params["w"], window_strides=(2, 2), padding=((1, 1), (1, 1)),
        dimension_numbers=("NHWC", "HWIO", "NHWC"))
    mean = jnp.mean(y, axis=(0, 1, 2))
    var = jnp.mean(jnp.square(y - mean), axis=(0, 1, 2))
    y = (y - mean) * (params["gamma"] / jnp.sqrt(var + eps)) + params["beta"]
    return jnp.transpose(y, (0, 3, 1, 2))


def init_params(key, cin, cout):
    w = jax.random.normal(key, (4, 4, cin, cout), jnp.float32) * 0.05
    # BatchNorm2d default affine init (weight=1, bias=0), eps=1e-5.
    return {"w": w,
            "gamma": jnp.ones((cout,), jnp.float32),
            "beta": jnp.zeros((cout,), jnp.float32)}


if __name__ == "__main__":
    key = jax.random.PRNGKey(0)
    k_w, k_x = jax.random.split(key)

    N, CIN, COUT, H, W = 2, 4, 8, 16, 16
    params = init_params(k_w, CIN, COUT)
    x = jax.random.normal(k_x, (N, CIN, H, W), jnp.float32)

    fwd = jax.jit(downblock_forward)
    out = fwd(params, x)
    jax.block_until_ready(out)

    assert out.shape == (N, COUT, H // 2, W // 2), out.shape
    assert bool(jnp.all(jnp.isfinite(out)))

    ref = jax.jit(downblock_reference)(params, x)
    max_err = float(jnp.max(jnp.abs(out - ref)))
    assert max_err < 0.1, f"max abs error vs reference: {max_err}"

    print("KERNEL_OK")
</pallas_src>

<mosaic_0001>
module attributes {stable_mosaic.version = 11 : i64} {
  func.func @_downblock_kernel(%arg0: i32, %arg1: memref<1x9x9x16xf32, #tpu.memory_space<vmem>>, %arg2: memref<64x8xbf16, #tpu.memory_space<vmem>>, %arg3: memref<1x8xf32, #tpu.memory_space<vmem>>, %arg4: memref<1x8xf32, #tpu.memory_space<vmem>>, %arg5: memref<128x8xf32, #tpu.memory_space<vmem>>, %arg6: memref<1x8xf32, #tpu.memory_space<vmem>>, %arg7: memref<1x8xf32, #tpu.memory_space<vmem>>) attributes {dimension_semantics = [#tpu.dimension_semantics<arbitrary>], iteration_bounds = array<i64: 2>, scalar_prefetch = 0 : i64, scratch_operands = 2 : i64, tpu.core_type = #tpu.core_type<tc>, window_params = [{transform_indices = @transform_0, window_bounds = array<i64: 1, 9, 9, 16>}, {pipeline_mode = #tpu.pipeline_mode<synchronous>, transform_indices = @transform_1, window_bounds = array<i64: 64, 8>}, {pipeline_mode = #tpu.pipeline_mode<synchronous>, transform_indices = @transform_2, window_bounds = array<i64: 1, 8>}, {pipeline_mode = #tpu.pipeline_mode<synchronous>, transform_indices = @transform_3, window_bounds = array<i64: 1, 8>}, {pipeline_mode = #tpu.pipeline_mode<synchronous>, transform_indices = @transform_4, window_bounds = array<i64: 128, 8>}]} {
    %c0_i32 = arith.constant 0 : i32
    %0 = arith.cmpi eq, %arg0, %c0_i32 : i32
    %1 = arith.extui %0 : i1 to i32
    %c0_i32_0 = arith.constant 0 : i32
    %2 = arith.cmpi ne, %1, %c0_i32_0 : i32
    scf.if %2 {
      %cst_20 = arith.constant 0.000000e+00 : f32
      %37 = vector.broadcast %cst_20 : f32 to vector<1x8xf32>
      %c0_21 = arith.constant 0 : index
      %c0_22 = arith.constant 0 : index
      %38 = vector.load %arg6[%c0_21, %c0_22] : memref<1x8xf32, #tpu.memory_space<vmem>>, vector<1x8xf32>
      tpu.vector_store %arg6[%c0_21, %c0_22], %37 {strides = array<i32>} : memref<1x8xf32, #tpu.memory_space<vmem>>, vector<1x8xf32>,
      %cst_23 = arith.constant 0.000000e+00 : f32
      %39 = vector.broadcast %cst_23 : f32 to vector<1x8xf32>
      %c0_24 = arith.constant 0 : index
      %c0_25 = arith.constant 0 : index
      %40 = vector.load %arg7[%c0_24, %c0_25] : memref<1x8xf32, #tpu.memory_space<vmem>>, vector<1x8xf32>
      tpu.vector_store %arg7[%c0_24, %c0_25], %39 {strides = array<i32>} : memref<1x8xf32, #tpu.memory_space<vmem>>, vector<1x8xf32>,
    } else {
    }
    %c0 = arith.constant 0 : index
    %c0_1 = arith.constant 0 : index
    %c0_2 = arith.constant 0 : index
    %c0_3 = arith.constant 0 : index
    %3 = vector.load %arg1[%c0, %c0_1, %c0_2, %c0_3] : memref<1x9x9x16xf32, #tpu.memory_space<vmem>>, vector<1x9x9x16xf32>
    %4 = vector.shape_cast %3 : vector<1x9x9x16xf32> to vector<9x9x16xf32>
    %cst = arith.constant 0.000000e+00 : f32
    %5 = vector.broadcast %cst : f32 to vector<9x9x16xf32>
    %6 = arith.cmpf oge, %4, %5 : vector<9x9x16xf32>
    %cst_4 = arith.constant 2.000000e-01 : f32
    %7 = vector.broadcast %cst_4 : f32 to vector<9x9x16xf32>
    %8 = arith.mulf %7, %4 : vector<9x9x16xf32>
    %9 = arith.select %6, %4, %8 : vector<9x9x16xi1>, vector<9x9x16xf32>
    %10 = vector.extract_strided_slice %9 {offsets = [0, 0, 0], sizes = [8, 8, 16], strides = [1, 1, 1]} : vector<9x9x16xf32> to vector<8x8x16xf32>
    %11 = vector.extract_strided_slice %9 {offsets = [0, 1, 0], sizes = [8, 8, 16], strides = [1, 1, 1]} : vector<9x9x16xf32> to vector<8x8x16xf32>
    %12 = vector.extract_strided_slice %9 {offsets = [1, 0, 0], sizes = [8, 8, 16], strides = [1, 1, 1]} : vector<9x9x16xf32> to vector<8x8x16xf32>
    %13 = vector.extract_strided_slice %9 {offsets = [1, 1, 0], sizes = [8, 8, 16], strides = [1, 1, 1]} : vector<9x9x16xf32> to vector<8x8x16xf32>
    %14 = tpu.concatenate %10, %11, %12, %13 in 2 : vector<8x8x16xf32>, vector<8x8x16xf32>, vector<8x8x16xf32>, vector<8x8x16xf32> -> vector<8x8x64xf32>
    %15 = vector.shape_cast %14 : vector<8x8x64xf32> to vector<64x64xf32>
    %16 = arith.truncf %15 : vector<64x64xf32> to vector<64x64xbf16>
    %c0_5 = arith.constant 0 : index
    %c0_6 = arith.constant 0 : index
    %17 = vector.load %arg2[%c0_5, %c0_6] : memref<64x8xbf16, #tpu.memory_space<vmem>>, vector<64x8xbf16>
    %cst_7 = arith.constant dense<0.000000e+00> : vector<64x8xf32>
    %18 = tpu.matmul %16, %17, %cst_7 {dimension_numbers = #tpu.dot_dimension_numbers<[1], [0], [0], [1], [0, 0, 1, 1], [], []>} : vector<64x64xbf16>, vector<64x8xbf16>, vector<64x8xf32> -> vector<64x8xf32>
    %c64_i32 = arith.constant 64 : i32
    %19 = arith.muli %arg0, %c64_i32 : i32
    %20 = tpu.assume_multiple %19, 8 : i32
    %21 = arith.index_cast %20 : i32 to index
    %c0_8 = arith.constant 0 : index
    %22 = vector.load %arg5[%21, %c0_8] : memref<128x8xf32, #tpu.memory_space<vmem>>, vector<64x8xf32>
    tpu.vector_store %arg5[%21, %c0_8], %18 {strides = array<i32>} : memref<128x8xf32, #tpu.memory_space<vmem>>, vector<64x8xf32>,
    %c0_9 = arith.constant 0 : index
    %c0_10 = arith.constant 0 : index
    %23 = vector.load %arg6[%c0_9, %c0_10] : memref<1x8xf32, #tpu.memory_space<vmem>>, vector<1x8xf32>
    %cst_11 = arith.constant dense<0.000000e+00> : vector<8xf32>
    %24 = vector.multi_reduction <add>, %18, %cst_11 [0] : vector<64x8xf32> to vector<8xf32>
    %25 = vector.shape_cast %24 : vector<8xf32> to vector<1x8xf32>
    %26 = arith.addf %23, %25 : vector<1x8xf32>
    %c0_12 = arith.constant 0 : index
    %c0_13 = arith.constant 0 : index
    %27 = vector.load %arg6[%c0_12, %c0_13] : memref<1x8xf32, #tpu.memory_space<vmem>>, vector<1x8xf32>
    tpu.vector_store %arg6[%c0_12, %c0_13], %26 {strides = array<i32>} : memref<1x8xf32, #tpu.memory_space<vmem>>, vector<1x8xf32>,
    %c0_14 = arith.constant 0 : index
    %c0_15 = arith.constant 0 : index
    %28 = vector.load %arg7[%c0_14, %c0_15] : memref<1x8xf32, #tpu.memory_space<vmem>>, vector<1x8xf32>
    %29 = arith.mulf %18, %18 : vector<64x8xf32>
    %cst_16 = arith.constant dense<0.000000e+00> : vector<8xf32>
    %30 = vector.multi_reduction <add>, %29, %cst_16 [0] : vector<64x8xf32> to vector<8xf32>
    %31 = vector.shape_cast %30 : vector<8xf32> to vector<1x8xf32>
    %32 = arith.addf %28, %31 : vector<1x8xf32>
    %c0_17 = arith.constant 0 : index
    %c0_18 = arith.constant 0 : index
    %33 = vector.load %arg7[%c0_17, %c0_18] : memref<1x8xf32, #tpu.memory_space<vmem>>, vector<1x8xf32>
    tpu.vector_store %arg7[%c0_17, %c0_18], %32 {strides = array<i32>} : memref<1x8xf32, #tpu.memory_space<vmem>>, vector<1x8xf32>,
    %c1_i32 = arith.constant 1 : i32
    %34 = arith.cmpi eq, %arg0, %c1_i32 : i32
    %35 = arith.extui %34 : i1 to i32
    %c0_i32_19 = arith.constant 0 : i32
    %36 = arith.cmpi ne, %35, %c0_i32_19 : i32
    scf.if %36 {
      %c0_20 = arith.constant 0 : index
      %c0_21 = arith.constant 0 : index
      %37 = vector.load %arg6[%c0_20, %c0_21] : memref<1x8xf32, #tpu.memory_space<vmem>>, vector<1x8xf32>
      %cst_22 = arith.constant 7.812500e-03 : f32
      %38 = vector.broadcast %cst_22 : f32 to vector<1x8xf32>
      %39 = arith.mulf %37, %38 : vector<1x8xf32>
      %c0_23 = arith.constant 0 : index
      %c0_24 = arith.constant 0 : index
      %40 = vector.load %arg7[%c0_23, %c0_24] : memref<1x8xf32, #tpu.memory_space<vmem>>, vector<1x8xf32>
      %cst_25 = arith.constant 7.812500e-03 : f32
      %41 = vector.broadcast %cst_25 : f32 to vector<1x8xf32>
      %42 = arith.mulf %40, %41 : vector<1x8xf32>
      %43 = arith.mulf %39, %39 : vector<1x8xf32>
      %44 = arith.subf %42, %43 : vector<1x8xf32>
      %c0_26 = arith.constant 0 : index
      %c0_27 = arith.constant 0 : index
      %45 = vector.load %arg3[%c0_26, %c0_27] : memref<1x8xf32, #tpu.memory_space<vmem>>, vector<1x8xf32>
      %cst_28 = arith.constant 9.99999974E-6 : f32
      %46 = vector.broadcast %cst_28 : f32 to vector<1x8xf32>
      %47 = arith.addf %44, %46 : vector<1x8xf32>
      %48 = math.rsqrt %47 : vector<1x8xf32>
      %49 = arith.mulf %45, %48 : vector<1x8xf32>
      %c0_29 = arith.constant 0 : index
      %c0_30 = arith.constant 0 : index
      %50 = vector.load %arg4[%c0_29, %c0_30] : memref<1x8xf32, #tpu.memory_space<vmem>>, vector<1x8xf32>
      %51 = arith.mulf %39, %49 : vector<1x8xf32>
      %52 = arith.subf %50, %51 : vector<1x8xf32>
      %c0_31 = arith.constant 0 : index
      %c0_32 = arith.constant 0 : index
      %53 = vector.load %arg5[%c0_31, %c0_32] : memref<128x8xf32, #tpu.memory_space<vmem>>, vector<128x8xf32>
      %54 = vector.broadcast %49 : vector<1x8xf32> to vector<128x8xf32>
      %55 = arith.mulf %53, %54 : vector<128x8xf32>
      %56 = vector.broadcast %52 : vector<1x8xf32> to vector<128x8xf32>
      %57 = arith.addf %55, %56 : vector<128x8xf32>
      %c0_33 = arith.constant 0 : index
      %c0_34 = arith.constant 0 : index
      %58 = vector.load %arg5[%c0_33, %c0_34] : memref<128x8xf32, #tpu.memory_space<vmem>>, vector<128x8xf32>
      tpu.vector_store %arg5[%c0_33, %c0_34], %57 {strides = array<i32>} : memref<128x8xf32, #tpu.memory_space<vmem>>, vector<128x8xf32>,
    } else {
    }
    return
  }
  func.func @transform_0(%arg0: i32) -> (i32, i32, i32, i32) {
    %c0_i32 = arith.constant 0 : i32
    %c0_i32_0 = arith.constant 0 : i32
    %c0_i32_1 = arith.constant 0 : i32
    %c0_i32_2 = arith.constant 0 : i32
    return %arg0, %c0_i32, %c0_i32_0, %c0_i32_1 : i32, i32, i32, i32
  }
  func.func @transform_1(%arg0: i32) -> (i32, i32) {
    %c0_i32 = arith.constant 0 : i32
    %c0_i32_0 = arith.constant 0 : i32
    %c0_i32_1 = arith.constant 0 : i32
    return %c0_i32, %c0_i32_0 : i32, i32
  }
  func.func @transform_2(%arg0: i32) -> (i32, i32) {
    %c0_i32 = arith.constant 0 : i32
    %c0_i32_0 = arith.constant 0 : i32
    %c0_i32_1 = arith.constant 0 : i32
    return %c0_i32, %c0_i32_0 : i32, i32
  }
  func.func @transform_3(%arg0: i32) -> (i32, i32) {
    %c0_i32 = arith.constant 0 : i32
    %c0_i32_0 = arith.constant 0 : i32
    %c0_i32_1 = arith.constant 0 : i32
    return %c0_i32, %c0_i32_0 : i32, i32
  }
  func.func @transform_4(%arg0: i32) -> (i32, i32) {
    %c0_i32 = arith.constant 0 : i32
    %c0_i32_0 = arith.constant 0 : i32
    %c0_i32_1 = arith.constant 0 : i32
    return %c0_i32, %c0_i32_0 : i32, i32
  }
}

</mosaic_0001>

<bundles_post_ra>
// kernel: downblock_forward.1
= control target key start
LH: loop header
LB: loop body
LE: loop exit
PB: predicated region body
PF: predicated region fallthrough
CT: control target
= control target key end

     0   :  { %s879_s15 = smov 0   ;;  %s1207_s0 = inlined_call_operand.vmem [shape: f32[2,9,9,16], index: 0, kind: input, shape index: {}]   ;;  %s1208_s1 = inlined_call_operand.vmem [shape: bf16[64,8], index: 1, kind: input, shape index: {}]   ;;  %s1209_s2 = inlined_call_operand.vmem [shape: f32[1,8], index: 2, kind: input, shape index: {}]   ;;  %s1210_s3 = inlined_call_operand.vmem [shape: f32[1,8], index: 3, kind: input, shape index: {}]   ;;  %s1211_s4 = inlined_call_operand.vmem [shape: f32[128,8], index: 4, kind: output, shape index: {}]  }
   0x1 LB: > { %s885_s16 = sadd.s32 4294967295, %s848_s15   ;;  %p716_p0 = scmp.ge.s32.totalorder %s848_s15, 1  ;;  %s848_s15 = sphi %s879_s15, %s14_s15  }
   0x2   : > { %p157_p1 = scmp.lt.s32.totalorder %s848_s15, 3 }
   0x4   : > { %p158_p2 = pnand %p716_p0, %p157_p1 }
   0x5   : > { %p178_p3 = scmp.lt.s32.totalorder (!%p158_p2), %s885_s16, 1  ;;  %p718_p4 = scmp.ne.s32.totalorder (!%p158_p2), %s885_s16, 0 }
   0x6   : > { %161 = sbr.rel (%p158_p2) target bundleno = 443 (0x1bb), region = 36 }
   0xb   : > { %s179_s17 = scalar_select %p178_p3, %s885_s16, 1 }
   0xc   : > { %187 = sbr.rel (%p718_p4) target bundleno = 19 (0x13), region = 40 }
   0xd   : > { %s763_s18 = smul.u32 144, %s179_s17 }
   0xf   : > { %s894_s21 = scalar_lea.vmem %s1207_s0, %s763_s18 }
  0x11   : > { %vm188_vm0 = vcmask 57344   ;;  %v850_v0 = vmov 0.0  }
  0x12   : > { %189 = vst.msk [vmem:[#allocation2] sm:$0x1] %vm188_vm0, %v850_v0  ;;  %190 = vst.msk [vmem:[#allocation3] sm:$0x1] %vm188_vm0, %v850_v0 }
  0x13 PF: > { %v193_v1 = vld [vmem:[%s894_s21 + $0x10] sm:$0xff]  ;;  %v195_v2 = vld [vmem:[%s894_s21 + $0x20] sm:$0xff]  ;;  %v194_v3 = vld [vmem:[%s894_s21 + $0x18] sm:$0x1]  ;;  %vm279_vm4 = vcmask 1046528   ;;  %s851_s22 = smov 32  }
  0x14   : > { %vm211_vm1 = vcmp.ge.f32.partialorder %v193_v1, 0.0  ;;  %vm213_vm2 = vcmp.ge.f32.partialorder %v195_v2, 0.0  ;;  %v229_v4 = vmul.f32 0.2, %v193_v1  ;;  %v231_v5 = vmul.f32 0.2, %v195_v2 }
  0x15   : > { %v196_v6 = vld [vmem:[%s894_s21 + $0x28] sm:$0x1]  ;;  %vm212_vm3 = vcmp.ge.f32.partialorder %v194_v3, 0.0  ;;  %v230_v7 = vmul.f32 0.2, %v194_v3  ;;  %v191_v11 = vld [vmem:[%s894_s21] sm:$0xff] }
  0x16   : > { %v901_v8 = vsel %vm211_vm1, %v193_v1, %v229_v4  ;;  %v903_v9 = vsel %vm213_vm2, %v195_v2, %v231_v5  ;;  %vm214_vm5 = vcmp.ge.f32.partialorder %v196_v6, 0.0  ;;  %v232_v10 = vmul.f32 0.2, %v196_v6  ;;  %v192_v12 = vld [vmem:[%s894_s21 + $0x8] sm:$0x1]  ;;  %v197_v17 = vld [vmem:[%s894_s21 + $0x30] sm:$0xff] }
  0x17   : > { %v286_v13 = vrot.slane %v903_v9, 1  ;;  %v776_v14 = vpack.i.bf16 %v903_v9, %v901_v8  ;;  %v283_v15 = vrot.slane %v901_v8, 1  ;;  %v248_v16 = vsel %vm212_vm3, %v194_v3, %v230_v7  ;;  %v199_v18 = vld [vmem:[%s894_s21 + $0x40] sm:$0xff]  ;;  %v198_v19 = vld [vmem:[%s894_s21 + $0x38] sm:$0x1]  ;;  %v205_v38 = vld [vmem:[%s894_s21 + $0x70] sm:$0xff] }
  0x18   : > { %v250_v20 = vsel %vm214_vm5, %v196_v6, %v232_v10  ;;  %v284_v21 = vrot.slane %v248_v16, 1  ;;  %vm209_vm6 = vcmp.ge.f32.partialorder %v191_v11, 0.0  ;;  %vm210_vm7 = vcmp.ge.f32.partialorder %v192_v12, 0.0  ;;  %v200_v22 = vld [vmem:[%s894_s21 + $0x48] sm:$0x1]  ;;  %v203_v32 = vld [vmem:[%s894_s21 + $0x60] sm:$0xff] }
  0x19   : > { %777 = vrot.lane.b32.xlu1 %v776_v14, %s851_s22  ;;  %v287_v23 = vrot.slane %v250_v20, 1  ;;  %v227_v24 = vmul.f32 0.2, %v191_v11  ;;  %v228_v25 = vmul.f32 0.2, %v192_v12  ;;  %vm215_vm8 = vcmp.ge.f32.partialorder %v197_v17, 0.0 }
  0x1a   : > { %v917_v26 = vsel %vm279_vm4, %v283_v15, %v284_v21  ;;  %vm217_vm9 = vcmp.ge.f32.partialorder %v199_v18, 0.0  ;;  %v233_v27 = vmul.f32 0.2, %v197_v17  ;;  %v235_v28 = vmul.f32 0.2, %v199_v18  ;;  %v934_v40 = vld [vmem:[%s894_s21 + $0x50] sm:$0xff] }
  0x1b   : > { %v920_v29 = vsel %vm279_vm4, %v286_v13, %v287_v23  ;;  %v922_v30 = vsel %vm209_vm6, %v191_v11, %v227_v24  ;;  %v246_v31 = vsel %vm210_vm7, %v192_v12, %v228_v25  ;;  %vm216_vm10 = vcmp.ge.f32.partialorder %v198_v19, 0.0  ;;  %v204_v33 = vld [vmem:[%s894_s21 + $0x68] sm:$0x1]  ;;  %v206_v39 = vld [vmem:[%s894_s21 + $0x78] sm:$0x1]  ;;  %v837_v54 = vld [vmem:[%s1208_s1 + $0x10] sm:$0xff]  }
  0x1c   : > { %v796_v34 = vpack.i.bf16 %v920_v29, %v917_v26  ;;  %v280_v35 = vrot.slane %v922_v30, 1  ;;  %v281_v36 = vrot.slane %v246_v31, 1  ;;  %v929_v37 = vsel %vm215_vm8, %v197_v17, %v233_v27  ;;  %v941_v44 = vld [vmem:[%s894_s21 + $0x58] sm:$0x1]  ;;  %s852_s27 = smov 16   ;;  %v207_v58 = vld [vmem:[%s894_s21 + $0x80] sm:$0xff] }
  0x1d   : > { %v937_v41 = vsel %vm217_vm9, %v199_v18, %v235_v28  ;;  %v289_v42 = vrot.slane %v929_v37, 1  ;;  %v234_v43 = vmul.f32 0.2, %v198_v19  ;;  %vm218_vm11 = vcmp.ge.f32.partialorder %v200_v22, 0.0  ;;  %v836_v49 = vld [vmem:[%s1208_s1 + $0x18] sm:$0xff]   ;;  %v838_v63 = vld [vmem:[%s1208_s1 + $0x8] sm:$0xff]  }
  0x1e   : > { %v282_v45 = vsel %vm279_vm4, %v280_v35, %v281_v36  ;;  %v292_v46 = vrot.slane %v937_v41, 1  ;;  %v781_v47 = vpack.i.bf16 %v937_v41, %v929_v37  ;;  %v236_v48 = vmul.f32 0.2, %v200_v22  ;;  %739 = vmatprep.subr.bf16.mxu0 %v836_v49  ;;  %v208_v59 = vld [vmem:[%s894_s21 + $0x88] sm:$0x1]  ;;  %755 = vmatprep.subr.bf16.mxu1 %v836_v49  ;;  %v839_v14 = vld [vmem:[%s1208_s1] sm:$0xff]  }
  0x1f   : > { %v786_v50 = vpack.i.bf16 %v917_v26, %v282_v45  ;;  %v252_v51 = vsel %vm216_vm10, %v198_v19, %v234_v43  ;;  %vm221_vm12 = vcmp.ge.f32.partialorder %v203_v32, 0.0  ;;  %vm222_vm13 = vcmp.ge.f32.partialorder %v204_v33, 0.0  ;;  %740 = vmatpush3.bf16.msra.mxu0 %v836_v49  ;;  %759 = vmatpush3.bf16.msra.mxu1 %v836_v49  ;;  %s853_s6 = smov 48   ;;  %s727_s7 = sshll.u32 %s885_s16, 6 }
  0x20   : > { %782 = vrot.lane.b32.xlu1 %v781_v47, %s851_s22  ;;  %v290_v52 = vrot.slane %v252_v51, 1  ;;  %v254_v53 = vsel %vm218_vm11, %v200_v22, %v236_v48  ;;  %vm223_vm14 = vcmp.ge.f32.partialorder %v205_v38, 0.0  ;;  %vm224_vm15 = vcmp.ge.f32.partialorder %v206_v39, 0.0  ;;  %741 = vmatprep.subr.bf16.mxu0 %v837_v54  ;;  %s1051_s10 = scalar_lea.vmem %s1211_s4, %s727_s7  ;;  %p728_p5 = scmp.ne.s32.totalorder %s885_s16, 1 }
  0x21   : > { %787 = vrot.lane.b32.xlu0 %v786_v50, %s852_s27  ;;  %v293_v55 = vrot.slane %v254_v53, 1  ;;  %v239_v56 = vmul.f32 0.2, %v203_v32  ;;  %v240_v57 = vmul.f32 0.2, %v204_v33  ;;  %vm219_vm0 = vcmp.ge.f32.partialorder %v934_v40, 0.0  ;;  %756 = vmatprep.subr.bf16.mxu1 %v837_v54 }
  0x22   : > { %v291_v60 = vsel %vm279_vm4, %v289_v42, %v290_v52  ;;  %v241_v61 = vmul.f32 0.2, %v205_v38  ;;  %v242_v62 = vmul.f32 0.2, %v206_v39  ;;  %vm220_vm1 = vcmp.ge.f32.partialorder %v941_v44, 0.0 }
  0x23   : > { %v791_v0 = vpack.i.bf16 %v291_v60, %v920_v29  ;;  %v294_v1 = vsel %vm279_vm4, %v292_v46, %v293_v55  ;;  %v968_v2 = vsel %vm221_vm12, %v203_v32, %v239_v56  ;;  %v258_v3 = vsel %vm222_vm13, %v204_v33, %v240_v57  ;;  %742 = vmatpush3.bf16.msra.mxu0 %v837_v54 }
  0x24   : > { %v801_v4 = vpack.i.bf16 %v294_v1, %v291_v60  ;;  %v972_v5 = vsel %vm223_vm14, %v205_v38, %v241_v61  ;;  %v260_v6 = vsel %vm224_vm15, %v206_v39, %v242_v62  ;;  %v298_v7 = vrot.slane %v968_v2, 1  ;;  %743 = vmatprep.subr.bf16.mxu0 %v838_v63  ;;  %760 = vmatpush3.bf16.msra.mxu1 %v837_v54 }
  0x25   : > { %792 = vrot.lane.b32.xlu0 %v791_v0, %s852_s27  ;;  %v299_v10 = vrot.slane %v258_v3, 1  ;;  %v301_v11 = vrot.slane %v972_v5, 1  ;;  %v302_v12 = vrot.slane %v260_v6, 1  ;;  %v237_v13 = vmul.f32 0.2, %v934_v40  ;;  %757 = vmatprep.subr.bf16.mxu1 %v838_v63 }
  0x26   : > { %802 = vrot.lane.b32.xlu1 %v801_v4, %s853_s6  ;;  %v238_v15 = vmul.f32 0.2, %v941_v44  ;;  %vm225_vm2 = vcmp.ge.f32.partialorder %v207_v58, 0.0  ;;  %v243_v16 = vmul.f32 0.2, %v207_v58  ;;  %vm226_vm3 = vcmp.ge.f32.partialorder %v208_v59, 0.0 }
  0x27   : > { %v300_v17 = vsel %vm279_vm4, %v298_v7, %v299_v10  ;;  %v303_v18 = vsel %vm279_vm4, %v301_v11, %v302_v12  ;;  %v989_v19 = vsel %vm219_vm0, %v934_v40, %v237_v13  ;;  %v244_v20 = vmul.f32 0.2, %v208_v59  ;;  %744 = vmatpush3.bf16.msra.mxu0 %v838_v63 }
  0x28   : > { %v811_v21 = vpack.i.bf16 %v303_v18, %v300_v17  ;;  %v256_v22 = vsel %vm220_vm1, %v941_v44, %v238_v15  ;;  %v295_v23 = vrot.slane %v989_v19, 1  ;;  %v261_v24 = vsel %vm225_vm2, %v207_v58, %v243_v16  ;;  %745 = vmatprep.subr.bf16.mxu0 %v839_v14  ;;  %761 = vmatpush3.bf16.msra.mxu1 %v838_v63 }
  0x29   : > { %797 = vrot.lane.b32.xlu0 %v796_v34, %s853_s6  ;;  %v296_v25 = vrot.slane %v256_v22, 1  ;;  %v354_v27 = vrot.slane %v261_v24, 1  ;;  %v821_v28 = vpack.i.bf16 %v261_v24, %v972_v5  ;;  %v262_v31 = vsel %vm226_vm3, %v208_v59, %v244_v20  ;;  %758 = vmatprep.subr.bf16.mxu1 %v839_v14 }
  0x2a   : > { %812 = vrot.lane.b32.xlu1 %v811_v21, %s852_s27  ;;  %v355_v33 = vrot.slane %v262_v31, 1  ;;  %v816_v26 = vpack.i.bf16 %v968_v2, %v989_v19  ;;  %vm390_vm5 = vcmask 261120   ;;  %vm399_vm6 = vcmask 392192  }
  0x2b   : > { %v297_v32 = vsel %vm279_vm4, %v295_v23, %v296_v25  ;;  %746 = vmatpush3.bf16.msra.mxu0 %v839_v14  ;;  %vm444_vm7 = vcmask 523264   ;;  %vm524_vm8 = vcmask 64512   ;;  %vm556_vm9 = vcmask 57344  }
  0x2c   : > { %v806_v35 = vpack.i.bf16 %v297_v32, %v294_v1  ;;  %v356_v36 = vsel %vm279_vm4, %v354_v27, %v355_v33  ;;  %762 = vmatpush3.bf16.msra.mxu1 %v839_v14  ;;  %v826_v34 = vpack.i.bf16 %v300_v17, %v297_v32  ;;  %vm381_vm4 = vcmask 130048  }
  0x2d   : > { %v831_v29 = vpack.i.bf16 %v356_v36, %v303_v18 }
  0x2e   : > { %807 = vrot.lane.b32.xlu0 %v806_v35, %s852_s27  ;;  %822 = vrot.lane.b32.xlu1 %v821_v28, %s851_s22 }
  0x32   : > { %817 = vrot.lane.b32.xlu0 %v816_v26, %s851_s22  ;;  %832 = vrot.lane.b32.xlu1 %v831_v29, %s853_s6 }
  0x36   : > { %827 = vrot.lane.b32.xlu0 %v826_v34, %s853_s6 }
  0x8b   : > { %v778_v38 = vpop.permute.xlu1 %777 }
  0x8c   : > { %v780_v50 = vunpack.i.h.bf16 %v778_v38  ;;  %v779_v51 = vunpack.i.l.bf16 %v778_v38 }
  0x92   : > { %v783_v39 = vpop.permute.xlu1 %782 }
  0x93   : > { %v788_v40 = vpop.permute.xlu0 %787  ;;  %v785_v44 = vunpack.i.h.bf16 %v783_v39  ;;  %v784_v45 = vunpack.i.l.bf16 %v783_v39 }
  0x94   : > { %v790_v42 = vunpack.i.h.bf16 %v788_v40  ;;  %v789_v43 = vunpack.i.l.bf16 %v788_v40 }
  0x96   : > { %v383_v54 = vsel %vm381_vm4, %v901_v8, %v790_v42  ;;  %v382_v55 = vsel %vm381_vm4, %v922_v30, %v789_v43 }
  0x97   : > { %v793_v46 = vpop.permute.xlu0 %792  ;;  %v391_v30 = vsel %vm390_vm5, %v382_v55, %v779_v51  ;;  %v392_v1 = vsel %vm390_vm5, %v383_v54, %v780_v50 }
  0x98   : > { %v795_v47 = vunpack.i.h.bf16 %v793_v46  ;;  %v794_v48 = vunpack.i.l.bf16 %v793_v46  ;;  %v803_v49 = vpop.permute.xlu1 %802 }
  0x99   : > { %v805_v52 = vunpack.i.h.bf16 %v803_v49  ;;  %v804_v53 = vunpack.i.l.bf16 %v803_v49 }
  0x9a   : > { %v385_v56 = vsel %vm381_vm4, %v929_v37, %v795_v47  ;;  %v384_v57 = vsel %vm381_vm4, %v903_v9, %v794_v48 }
  0x9b   : > { %v393_v58 = vsel %vm390_vm5, %v384_v57, %v784_v45  ;;  %v394_v59 = vsel %vm390_vm5, %v385_v56, %v785_v44  ;;  %v798_v60 = vpop.permute.xlu0 %797 }
  0x9c   : > { %v800_v61 = vunpack.i.h.bf16 %v798_v60  ;;  %v799_v62 = vunpack.i.l.bf16 %v798_v60  ;;  %v813_v63 = vpop.permute.xlu1 %812  ;;  %v402_v0 = vsel %vm399_vm6, %v393_v58, %v804_v53  ;;  %v403_v8 = vsel %vm399_vm6, %v394_v59, %v805_v52 }
  0x9d   : > { %v409_v4 = vpack.c.bf16 %v403_v8, %v402_v0  ;;  %v815_v10 = vunpack.i.h.bf16 %v813_v63  ;;  %v814_v11 = vunpack.i.l.bf16 %v813_v63 }
  0x9e   : > { %v400_v37 = vsel %vm399_vm6, %v391_v30, %v799_v62  ;;  %v401_v9 = vsel %vm399_vm6, %v392_v1, %v800_v61 }
  0x9f   : > { %v408_v3 = vpack.c.bf16 %v401_v9, %v400_v37  ;;  %v389_v16 = vsel %vm381_vm4, %v972_v5, %v815_v10  ;;  %v388_v17 = vsel %vm381_vm4, %v968_v2, %v814_v11 }
  0xa0   : > { %v808_v6 = vpop.permute.xlu0 %807  ;;  %v823_v7 = vpop.permute.xlu1 %822 }
  0xa1   : > { %747 = vmatprep.mubr.msk.bf16.mxu0 %vm444_vm7, %v408_v3  ;;  %v810_v12 = vunpack.i.h.bf16 %v808_v6  ;;  %v809_v13 = vunpack.i.l.bf16 %v808_v6  ;;  %v825_v18 = vunpack.i.h.bf16 %v823_v7  ;;  %v824_v20 = vunpack.i.l.bf16 %v823_v7 }
  0xa2   : > { %748 = vmatmul.mubr.msk.bf16.vlgmr.msra.gmra.mxu0 %vm444_vm7, %v409_v4 }
  0xa3   : > { %v387_v25 = vsel %vm381_vm4, %v989_v19, %v810_v12  ;;  %v386_v27 = vsel %vm381_vm4, %v937_v41, %v809_v13  ;;  %v397_v31 = vsel %vm390_vm5, %v388_v17, %v824_v20  ;;  %v398_v5 = vsel %vm390_vm5, %v389_v16, %v825_v18 }
  0xa4   : > { %v818_v14 = vpop.permute.xlu0 %817  ;;  %v833_v15 = vpop.permute.xlu1 %832 }
  0xa5   : > { %v820_v21 = vunpack.i.h.bf16 %v818_v14  ;;  %v819_v22 = vunpack.i.l.bf16 %v818_v14  ;;  %v835_v23 = vunpack.i.h.bf16 %v833_v15  ;;  %v834_v24 = vunpack.i.l.bf16 %v833_v15 }
  0xa7   : > { %v406_v33 = vsel %vm399_vm6, %v397_v31, %v834_v24  ;;  %v407_v35 = vsel %vm399_vm6, %v398_v5, %v835_v23  ;;  %v395_v36 = vsel %vm390_vm5, %v386_v27, %v819_v22  ;;  %v396_v26 = vsel %vm390_vm5, %v387_v25, %v820_v21 }
  0xa8   : > { %v828_v28 = vpop.permute.xlu0 %827  ;;  %v411_v34 = vpack.c.bf16 %v407_v35, %v406_v33 }
  0xa9   : > { %v830_v32 = vunpack.i.h.bf16 %v828_v28  ;;  %v829_v2 = vunpack.i.l.bf16 %v828_v28 }
  0xab   : > { %v404_v19 = vsel %vm399_vm6, %v395_v36, %v829_v2  ;;  %v405_v41 = vsel %vm399_vm6, %v396_v26, %v830_v32  ;;  %v533_v2 = vld [vmem:[#allocation2] sm:$0x1]  ;;  %v558_v36 = vld [vmem:[#allocation3] sm:$0x1] }
  0xac   : > { %v410_v29 = vpack.c.bf16 %v405_v41, %v404_v19 }
  0xae   : > { %751 = vmatprep.mubr.msk.bf16.mxu1 %vm444_vm7, %v410_v29 }
  0xaf   : > { %752 = vmatmul.mubr.msk.bf16.vlgmr.msra.gmra.mxu1 %vm444_vm7, %v411_v34 }
 0x162   : > { %v749_v38 = vpop.f32.mrf.mxu0 }
 0x163   : > { %527 = vst.msk [vmem:[%s1051_s10 + $0x10] sm:$0xff] %vm524_vm8, %v749_v38  ;;  %v561_v49 = vmul.f32 %v749_v38, %v749_v38  ;;  %v537_v52 = vsel %vm524_vm8, %v749_v38, 0.0 }
 0x164   : > { %v491_v39 = vpop.f32.mrf.mxu0 }
 0x165   : > { %525 = vst.msk [vmem:[%s1051_s10] sm:$0xff] %vm524_vm8, %v491_v39  ;;  %v559_v42 = vmul.f32 %v491_v39, %v491_v39  ;;  %v534_v46 = vsel %vm524_vm8, %v491_v39, 0.0  ;;  %v570_v55 = vsel %vm524_vm8, %v561_v49, 0.0 }
 0x166   : > { %v750_v40 = vpop.f32.mrf.mxu0 }
 0x167   : > { %528 = vst.msk [vmem:[%s1051_s10 + $0x18] sm:$0xff] %vm524_vm8, %v750_v40  ;;  %v567_v50 = vsel %vm524_vm8, %v559_v42, 0.0  ;;  %v562_v56 = vmul.f32 %v750_v40, %v750_v40  ;;  %v539_v59 = vsel %vm524_vm8, %v750_v40, 0.0 }
 0x168   : > { %v494_v43 = vpop.f32.mrf.mxu0 }
 0x169   : > { %526 = vst.msk [vmem:[%s1051_s10 + $0x8] sm:$0xff] %vm524_vm8, %v494_v43  ;;  %v535_v44 = vsel %vm524_vm8, %v494_v43, 0.0  ;;  %v560_v45 = vmul.f32 %v494_v43, %v494_v43  ;;  %v572_v0 = vsel %vm524_vm8, %v562_v56, 0.0 }
 0x16a   : > { %v536_v47 = vadd.f32 %v535_v44, %v534_v46 }
 0x16b   : > { %v568_v48 = vsel %vm524_vm8, %v560_v45, 0.0 }
 0x16c   : > { %v569_v51 = vadd.f32 %v568_v48, %v567_v50  ;;  %v538_v53 = vadd.f32 %v537_v52, %v536_v47 }
 0x16e   : > { %v571_v57 = vadd.f32 %v570_v55, %v569_v51  ;;  %v540_v62 = vadd.f32 %v539_v59, %v538_v53 }
 0x16f   : > { %v753_v54 = vpop.f32.mrf.mxu1 }
 0x170   : > { %531 = vst.msk [vmem:[%s1051_s10 + $0x30] sm:$0xff] %vm524_vm8, %v753_v54  ;;  %v573_v1 = vadd.f32 %v572_v0, %v571_v57  ;;  %v565_v9 = vmul.f32 %v753_v54, %v753_v54  ;;  %v545_v10 = vsel %vm524_vm8, %v753_v54, 0.0 }
 0x171   : > { %v507_v58 = vpop.f32.mrf.mxu1 }
 0x172   : > { %529 = vst.msk [vmem:[%s1051_s10 + $0x20] sm:$0xff] %vm524_vm8, %v507_v58  ;;  %v541_v60 = vsel %vm524_vm8, %v507_v58, 0.0  ;;  %v563_v61 = vmul.f32 %v507_v58, %v507_v58  ;;  %v578_v15 = vsel %vm524_vm8, %v565_v9, 0.0 }
 0x173   : > { %v754_v63 = vpop.f32.mrf.mxu1  ;;  %v542_v30 = vadd.f32 %v541_v60, %v540_v62 }
 0x174   : > { %v574_v8 = vsel %vm524_vm8, %v563_v61, 0.0  ;;  %532 = vst.msk [vmem:[%s1051_s10 + $0x38] sm:$0xff] %vm524_vm8, %v754_v63  ;;  %v566_v11 = vmul.f32 %v754_v63, %v754_v63  ;;  %v547_v16 = vsel %vm524_vm8, %v754_v63, 0.0 }
 0x175   : > { %v510_v37 = vpop.f32.mrf.mxu1  ;;  %v575_v6 = vadd.f32 %v574_v8, %v573_v1 }
 0x176   : > { %530 = vst.msk [vmem:[%s1051_s10 + $0x28] sm:$0xff] %vm524_vm8, %v510_v37  ;;  %v543_v3 = vsel %vm524_vm8, %v510_v37, 0.0  ;;  %v564_v4 = vmul.f32 %v510_v37, %v510_v37  ;;  %v580_v20 = vsel %vm524_vm8, %v566_v11, 0.0 }
 0x177   : > { %v544_v7 = vadd.f32 %v543_v3, %v542_v30 }
 0x178   : > { %v576_v12 = vsel %vm524_vm8, %v564_v4, 0.0 }
 0x179   : > { %v546_v13 = vadd.f32 %v545_v10, %v544_v7  ;;  %v577_v14 = vadd.f32 %v576_v12, %v575_v6 }
 0x17b   : > { %v548_v17 = vadd.f32 %v547_v16, %v546_v13  ;;  %v579_v18 = vadd.f32 %v578_v15, %v577_v14 }
 0x17d   : > { %v549_v21 = vrot.slane %v548_v17, 4  ;;  %v581_v22 = vadd.f32 %v580_v20, %v579_v18 }
 0x17f   : > { %v550_v23 = vadd.f32 %v549_v21, %v548_v17  ;;  %v582_v24 = vrot.slane %v581_v22, 4 }
 0x181   : > { %v551_v25 = vrot.slane %v550_v23, 2  ;;  %v583_v27 = vadd.f32 %v582_v24, %v581_v22 }
 0x183   : > { %v552_v28 = vadd.f32 %v551_v25, %v550_v23  ;;  %v584_v31 = vrot.slane %v583_v27, 2 }
 0x185   : > { %v553_v5 = vrot.slane %v552_v28, 1  ;;  %v585_v32 = vadd.f32 %v584_v31, %v583_v27 }
 0x187   : > { %v554_v33 = vadd.f32 %v553_v5, %v552_v28  ;;  %v586_v35 = vrot.slane %v585_v32, 1 }
 0x189   : > { %v555_v26 = vadd.f32 %v554_v33, %v533_v2  ;;  %v587_v19 = vadd.f32 %v586_v35, %v585_v32  ;;  %593 = sbr.rel (%p728_p5) target bundleno = 443 (0x1bb), region = 44 }
 0x18b   : > { %557 = vst.msk [vmem:[#allocation2] sm:$0x1] %vm556_vm9, %v555_v26  ;;  %v588_v41 = vadd.f32 %v587_v19, %v558_v36 }
 0x18d   : > { %589 = vst.msk [vmem:[#allocation3] sm:$0x1] %vm556_vm9, %v588_v41 }
 0x18e   : > { %v624_v44 = vlaneseq  ;;  %v600_v46 = vld [vmem:[%s1209_s2] sm:$0x1]  ;;  %v608_v52 = vld [vmem:[%s1211_s4 + $0x8] sm:$0xff]  ;;  %v609_v53 = vld [vmem:[%s1211_s4 + $0x10] sm:$0xff] }
 0x18f   : > { %v604_v50 = vld [vmem:[%s1210_s3] sm:$0x1]  ;;  %v610_v54 = vld [vmem:[%s1211_s4 + $0x18] sm:$0xff]  ;;  %v612_v58 = vld [vmem:[%s1211_s4 + $0x28] sm:$0xff] }
 0x190   : > { %v625_v45 = vshrl.u32 %v624_v44, 7  ;;  %v607_v51 = vld [vmem:[%s1211_s4] sm:$0xff]  ;;  %v613_v59 = vld [vmem:[%s1211_s4 + $0x30] sm:$0xff]  ;;  %v614_v60 = vld [vmem:[%s1211_s4 + $0x38] sm:$0xff] }
 0x191   : > { %v611_v55 = vld [vmem:[%s1211_s4 + $0x20] sm:$0xff]  ;;  %v616_v62 = vld [vmem:[%s1211_s4 + $0x48] sm:$0xff]  ;;  %v617_v63 = vld [vmem:[%s1211_s4 + $0x50] sm:$0xff] }
 0x192   : > { %v594_v29 = vld [vmem:[#allocation2] sm:$0x1]  ;;  %v626_v47 = vsub.s32 0, %v625_v45  ;;  %v618_v37 = vld [vmem:[%s1211_s4 + $0x58] sm:$0xff]  ;;  %v620_v3 = vld [vmem:[%s1211_s4 + $0x68] sm:$0xff] }
 0x193   : > { %v595_v38 = vmul.f32 0.0078125, %v594_v29  ;;  %v615_v61 = vld [vmem:[%s1211_s4 + $0x40] sm:$0xff]  ;;  %v621_v24 = vld [vmem:[%s1211_s4 + $0x70] sm:$0xff]  ;;  %v622_v25 = vld [vmem:[%s1211_s4 + $0x78] sm:$0xff] }
 0x194   : > { %v596_v34 = vld [vmem:[#allocation3] sm:$0x1] }
 0x195   : > { %v597_v39 = vmul.f32 0.0078125, %v596_v34  ;;  %v598_v40 = vmul.f32 %v595_v38, %v595_v38  ;;  %v619_v9 = vld [vmem:[%s1211_s4 + $0x60] sm:$0xff] }
 0x197   : > { %v599_v42 = vsub.f32 %v597_v39, %v598_v40 }
 0x199   : > { %v601_v43 = vadd.f32 1e-05, %v599_v42 }
 0x19b   : > { %840 = vrsqrt.f32 %v601_v43 }
 0x1a8   : > { %v841_v48 = vpop.eup %840 }
 0x1a9   : > { %v603_v49 = vmul.f32 %v841_v48, %v600_v46 }
 0x1ab   : > { %v605_v56 = vmul.f32 %v603_v49, %v595_v38  ;;  %v627_v57 = vrot.slane %v603_v49, %v626_v47 }
 0x1ad   : > { %v606_v0 = vsub.f32 %v604_v50, %v605_v56  ;;  %v629_v8 = vmul.f32 %v627_v57, %v607_v51  ;;  %v630_v30 = vmul.f32 %v627_v57, %v608_v52  ;;  %v631_v1 = vmul.f32 %v627_v57, %v609_v53 }
 0x1ae   : > { %v632_v4 = vmul.f32 %v627_v57, %v610_v54  ;;  %v633_v6 = vmul.f32 %v627_v57, %v611_v55  ;;  %v634_v7 = vmul.f32 %v627_v57, %v612_v58  ;;  %v635_v10 = vmul.f32 %v627_v57, %v613_v59 }
 0x1af   : > { %v649_v11 = vrot.slane %v606_v0, %v626_v47  ;;  %v636_v12 = vmul.f32 %v627_v57, %v614_v60  ;;  %v637_v13 = vmul.f32 %v627_v57, %v615_v61  ;;  %v638_v14 = vmul.f32 %v627_v57, %v616_v62 }
 0x1b0   : > { %v639_v15 = vmul.f32 %v627_v57, %v617_v63  ;;  %v640_v16 = vmul.f32 %v627_v57, %v618_v37  ;;  %v641_v17 = vmul.f32 %v627_v57, %v619_v9  ;;  %v642_v18 = vmul.f32 %v627_v57, %v620_v3 }
 0x1b1   : > { %v651_v20 = vadd.f32 %v649_v11, %v629_v8  ;;  %v652_v21 = vadd.f32 %v649_v11, %v630_v30  ;;  %v653_v22 = vadd.f32 %v649_v11, %v631_v1  ;;  %v654_v23 = vadd.f32 %v649_v11, %v632_v4 }
 0x1b2   : > { %v655_v27 = vadd.f32 %v649_v11, %v633_v6  ;;  %v656_v28 = vadd.f32 %v649_v11, %v634_v7  ;;  %v657_v31 = vadd.f32 %v649_v11, %v635_v10  ;;  %v658_v5 = vadd.f32 %v649_v11, %v636_v12 }
 0x1b3   : > { %667 = vst.msk [vmem:[%s1211_s4] sm:$0xff] %vm524_vm8, %v651_v20  ;;  %668 = vst.msk [vmem:[%s1211_s4 + $0x8] sm:$0xff] %vm524_vm8, %v652_v21  ;;  %v659_v32 = vadd.f32 %v649_v11, %v637_v13  ;;  %v660_v2 = vadd.f32 %v649_v11, %v638_v14  ;;  %v661_v33 = vadd.f32 %v649_v11, %v639_v15 }
 0x1b4   : > { %669 = vst.msk [vmem:[%s1211_s4 + $0x10] sm:$0xff] %vm524_vm8, %v653_v22  ;;  %670 = vst.msk [vmem:[%s1211_s4 + $0x18] sm:$0xff] %vm524_vm8, %v654_v23  ;;  %v662_v35 = vadd.f32 %v649_v11, %v640_v16  ;;  %v663_v36 = vadd.f32 %v649_v11, %v641_v17  ;;  %v664_v26 = vadd.f32 %v649_v11, %v642_v18 }
 0x1b5   : > { %671 = vst.msk [vmem:[%s1211_s4 + $0x20] sm:$0xff] %vm524_vm8, %v655_v27  ;;  %672 = vst.msk [vmem:[%s1211_s4 + $0x28] sm:$0xff] %vm524_vm8, %v656_v28  ;;  %v643_v19 = vmul.f32 %v627_v57, %v621_v24  ;;  %v644_v41 = vmul.f32 %v627_v57, %v622_v25 }
 0x1b6   : > { %673 = vst.msk [vmem:[%s1211_s4 + $0x30] sm:$0xff] %vm524_vm8, %v657_v31  ;;  %674 = vst.msk [vmem:[%s1211_s4 + $0x38] sm:$0xff] %vm524_vm8, %v658_v5 }
 0x1b7   : > { %675 = vst.msk [vmem:[%s1211_s4 + $0x40] sm:$0xff] %vm524_vm8, %v659_v32  ;;  %676 = vst.msk [vmem:[%s1211_s4 + $0x48] sm:$0xff] %vm524_vm8, %v660_v2  ;;  %v665_v29 = vadd.f32 %v649_v11, %v643_v19  ;;  %v666_v34 = vadd.f32 %v649_v11, %v644_v41 }
 0x1b8   : > { %677 = vst.msk [vmem:[%s1211_s4 + $0x50] sm:$0xff] %vm524_vm8, %v661_v33  ;;  %678 = vst.msk [vmem:[%s1211_s4 + $0x58] sm:$0xff] %vm524_vm8, %v662_v35 }
 0x1b9   : > { %679 = vst.msk [vmem:[%s1211_s4 + $0x60] sm:$0xff] %vm524_vm8, %v663_v36  ;;  %680 = vst.msk [vmem:[%s1211_s4 + $0x68] sm:$0xff] %vm524_vm8, %v664_v26 }
 0x1ba   : > { %681 = vst.msk [vmem:[%s1211_s4 + $0x70] sm:$0xff] %vm524_vm8, %v665_v29  ;;  %682 = vst.msk [vmem:[%s1211_s4 + $0x78] sm:$0xff] %vm524_vm8, %v666_v34 }
 0x1bb PF: > { %s14_s15 = sadd.s32 1, %s848_s15  }
 0x1bc   : > { %p11_p6 = scmp.ge.s32.totalorder %s14_s15, 4  }
 0x1be   :  { %13 = sbr.rel (!%p11_p6) target bundleno = 1 (0x1), region = 71 }

</bundles_post_ra>
